<compile_context>
chip_gen: v7x
topology: tpu7x:2x2x1
jax: 0.10.0
libtpu: 0.0.40
codegen_flags: <defaults>
</compile_context>

<pallas_src>
import numpy as np
import jax
import jax.numpy as jnp
from jax.experimental import pallas as pl
from jax.experimental.pallas import tpu as pltpu

LANE = 128
SUBLANE = 8


def _round_up(v, m):
    return (v + m - 1) // m * m


def _chip_prefs():
    """(row_tile, activation storage dtype) per TPU generation."""
    kind = ""
    try:
        kind = jax.devices()[0].device_kind.lower()
    except Exception:
        pass
    newgen = ("v6" in kind) or ("v7" in kind)
    row_tile = 256 if newgen else 128                     # 2x256^2 MXU vs 4x128^2
    act_dtype = jnp.bfloat16 if newgen else jnp.float32   # bf16 VPU only on v6e/v7x
    return row_tile, act_dtype


def _vmem_limit_bytes():
    """~75% of per-core VMEM: ~96 MiB on 128 MiB parts, ~48 MiB on v7x."""
    cap = None
    try:
        cap = getattr(pltpu.get_tpu_info(), "vmem_capacity_bytes", None)
    except Exception:
        cap = None
    if not cap:
        cap = 64 * 2 ** 20          # conservative fallback (v7x per-TC physical)
    return int(cap) * 3 // 4


def _cparams(sem, vmem_limit):
    return pltpu.CompilerParams(dimension_semantics=sem,
                                vmem_limit_bytes=vmem_limit)


# ----------------------------------------------------------------------------
# Kernels
# ----------------------------------------------------------------------------
def embed_kernel(x_ref, w_ref, b_ref, h_ref):
    h = jnp.dot(x_ref[...], w_ref[...],
                preferred_element_type=jnp.float32) + b_ref[...]
    h_ref[...] = h.astype(h_ref.dtype)


def leconv_project_kernel(h_ref, w123_ref, b123_ref, deg_ref, a_ref, rem_ref):
    """Fused lin1|lin2|lin3 projection for one node-row tile.

    Outputs:  a   = lin1(h)+b1           (bf16, MXU input of the aggregation)
              rem = lin3(h)+b3 - deg*lin2(h)   (f32, added after aggregation)
    """
    hp = a_ref.shape[1]
    h = h_ref[...].astype(jnp.float32)
    abc = jnp.dot(h, w123_ref[...],
                  preferred_element_type=jnp.float32) + b123_ref[...]
    a = abc[:, 0 * hp:1 * hp]          # vreg-aligned lane slices
    b = abc[:, 1 * hp:2 * hp]
    c = abc[:, 2 * hp:3 * hp]
    a_ref[...] = a.astype(a_ref.dtype)
    rem_ref[...] = c - deg_ref[...] * b


def leconv_aggregate_kernel(kmap_ref, nact_ref, adj_ref, a_ref, rem_ref,
                            h_ref, acc_ref):
    """agg_i = sum_j adj[i,j] * a_j  over the active column tiles only."""
    i = pl.program_id(0)
    k = pl.program_id(1)

    @pl.when(k == 0)
    def _():
        acc_ref[...] = jnp.zeros_like(acc_ref)

    # Skip column tiles that cannot contain edges for this row tile
    # (block-diagonal adjacency); padded iterations repeat the previous block
    # index so no extra DMA is issued either.
    @pl.when(k < nact_ref[i])
    def _():
        acc_ref[...] += jnp.dot(adj_ref[...], a_ref[...],
                                preferred_element_type=jnp.float32)

    @pl.when(k == pl.num_programs(1) - 1)
    def _():
        h_ref[...] = jnp.maximum(acc_ref[...] + rem_ref[...], 0.0
                                 ).astype(h_ref.dtype)


def readout_kernel(pool_ref, h_ref, wf1_ref, bf1_ref, wf2_ref, bf2_ref,
                   out_ref, acc_ref):
    """global_mean_pool (reduction over node tiles) + fc_out MLP."""
    k = pl.program_id(0)

    @pl.when(k == 0)
    def _():
        acc_ref[...] = jnp.zeros_like(acc_ref)

    acc_ref[...] += jnp.dot(pool_ref[...].astype(jnp.float32),
                            h_ref[...].astype(jnp.float32),
                            preferred_element_type=jnp.float32)

    @pl.when(k == pl.num_programs(0) - 1)
    def _():
        t = jnp.maximum(
            jnp.dot(acc_ref[...], wf1_ref[...],
                    preferred_element_type=jnp.float32) + bf1_ref[...], 0.0)
        out_ref[...] = (jnp.dot(t, wf2_ref[...],
                                preferred_element_type=jnp.float32)
                        + bf2_ref[...])


# ----------------------------------------------------------------------------
# Wrapper
# ----------------------------------------------------------------------------
def spmotif_forward(x, edge_index, batch, edge_attr, params, num_graphs,
                    num_class, edge_atten=None):
    N, x_dim = x.shape
    TM, act_dtype = _chip_prefs()
    TK = LANE
    Np = _round_up(max(int(N), TM), TM)   # multiple of TM (and of 128): lane-dense
    nti = Np // TM                        # node-row tiles
    ntk = Np // TK                        # adjacency column tiles

    hp = params["w_emb"].shape[1]         # lane-padded hidden
    h2p = params["wf1"].shape[1]          # lane-padded 2*hidden
    cp = params["wf2"].shape[1]           # lane-padded num_class
    n_layers = params["w123"].shape[0]
    B = int(num_graphs)
    Bp = _round_up(max(B, SUBLANE), SUBLANE)
    vmem_limit = _vmem_limit_bytes()

    # --- per-edge scalar weight ----------------------------------------------
    if edge_attr.ndim > 1:
        assert edge_attr.shape[-1] == 1, (
            "edge_attr is used as a scalar edge_weight; edge_attr_dim must be 1")
    w = edge_attr.reshape(-1).astype(jnp.float32)
    if edge_atten is not None:
        w = w * edge_atten.reshape(-1).astype(jnp.float32)
    src = edge_index[0]
    dst = edge_index[1]

    # Dense weighted adjacency: adj[i, j] = sum of weights over edges j -> i.
    # TODO(synk): replace this wrapper-side scatter + dense [Np,Np] buffer with
    # in-kernel edge-list aggregation (scalar prefetch) at real E/N.
    adj = jnp.zeros((Np, Np), jnp.float32).at[dst, src].add(w)
    adj_bf16 = adj.astype(jnp.bfloat16)
    deg = jnp.zeros((Np,), jnp.float32).at[dst].add(w).reshape(Np, 1)  # exact f32

    # mean-pool matrix [Bp, Np]; bf16 halves its DMA bytes (values are 0 or 1/n).
    onehot = (batch[None, :] == jnp.arange(B)[:, None]).astype(jnp.float32)
    counts = jnp.clip(jnp.sum(onehot, axis=1, keepdims=True), 1.0, None)
    pool = jnp.pad(onehot / counts,
                   ((0, Bp - B), (0, Np - N))).astype(jnp.bfloat16)

    xp = jnp.pad(x.astype(jnp.float32), ((0, Np - N), (0, 0)))

    # --- block-sparsity map for the (block-diagonal) adjacency -----------------
    # For each node-row tile, nonzero adjacency columns lie inside the contiguous
    # src-range of its incoming edges (exact for PyG per-graph node ordering).
    src_np = np.asarray(src)
    dst_np = np.asarray(dst)
    row_of = dst_np // TM
    col_of = src_np // TK
    k_lo = np.zeros((nti,), np.int64)
    k_hi = np.full((nti,), -1, np.int64)
    for t in range(nti):
        m = row_of == t
        if m.any():
            k_lo[t] = col_of[m].min()
            k_hi[t] = col_of[m].max()
    nact_np = np.maximum(k_hi - k_lo + 1, 0).astype(np.int32)
    kmax = int(max(1, nact_np.max()))
    # TODO(synk): set kmax = ntk (static worst case) to keep this wrapper jittable.
    kmap_np = np.zeros((nti, kmax), np.int32)
    for t in range(nti):
        last = max(int(nact_np[t]) - 1, 0)
        for kk in range(kmax):
            kmap_np[t, kk] = int(k_lo[t]) + min(kk, last)  # repeat last valid block
    kmap = jnp.asarray(kmap_np)
    nact = jnp.asarray(nact_np)

    # --- 1) node embedding ------------------------------------------------------
    h = pl.pallas_call(
        embed_kernel,
        out_shape=jax.ShapeDtypeStruct((Np, hp), act_dtype),
        grid=(nti,),
        in_specs=[pl.BlockSpec((TM, x_dim), lambda i: (i, 0)),
                  pl.BlockSpec((x_dim, hp), lambda i: (0, 0)),
                  pl.BlockSpec((1, hp), lambda i: (0, 0))],
        out_specs=pl.BlockSpec((TM, hp), lambda i: (i, 0)),
        compiler_params=_cparams(("parallel",), vmem_limit),
    )(xp, params["w_emb"], params["b_emb"])

    # --- 2) LEConv layers -------------------------------------------------------
    agg_flops = int(2 * int(nact_np.sum()) * TM * TK * hp)
    agg_bytes = int(int(nact_np.sum()) * (TM * TK + TK * hp) * 2
                    + 2 * Np * hp * 4)
    for l in range(n_layers):
        a_bf16, rem = pl.pallas_call(
            leconv_project_kernel,
            out_shape=(jax.ShapeDtypeStruct((Np, hp), jnp.bfloat16),
                       jax.ShapeDtypeStruct((Np, hp), jnp.float32)),
            grid=(nti,),
            in_specs=[pl.BlockSpec((TM, hp), lambda i: (i, 0)),
                      pl.BlockSpec((hp, 3 * hp), lambda i: (0, 0)),
                      pl.BlockSpec((1, 3 * hp), lambda i: (0, 0)),
                      pl.BlockSpec((TM, 1), lambda i: (i, 0))],
            out_specs=[pl.BlockSpec((TM, hp), lambda i: (i, 0)),
                       pl.BlockSpec((TM, hp), lambda i: (i, 0))],
            compiler_params=_cparams(("parallel",), vmem_limit),
        )(h, params["w123"][l], params["b123"][l], deg)

        h = pl.pallas_call(
            leconv_aggregate_kernel,
            out_shape=jax.ShapeDtypeStruct((Np, hp), act_dtype),
            grid_spec=pltpu.PrefetchScalarGridSpec(
                num_scalar_prefetch=2,
                grid=(nti, kmax),
                in_specs=[
                    pl.BlockSpec((TM, TK),
                                 lambda i, k, kmap, nact: (i, kmap[i, k])),
                    pl.BlockSpec((TK, hp),
                                 lambda i, k, kmap, nact: (kmap[i, k], 0)),
                    pl.BlockSpec((TM, hp),
                                 lambda i, k, kmap, nact: (i, 0)),
                ],
                out_specs=pl.BlockSpec((TM, hp),
                                       lambda i, k, kmap, nact: (i, 0)),
                scratch_shapes=[pltpu.VMEM((TM, hp), jnp.float32)],
            ),
            compiler_params=_cparams(("parallel", "arbitrary"), vmem_limit),
            cost_estimate=pl.CostEstimate(flops=agg_flops, transcendentals=0,
                                          bytes_accessed=agg_bytes),
        )(kmap, nact, adj_bf16, a_bf16, rem)

    # --- 3) global mean pool + readout MLP ---------------------------------------
    out = pl.pallas_call(
        readout_kernel,
        out_shape=jax.ShapeDtypeStruct((Bp, cp), jnp.float32),
        grid=(nti,),
        in_specs=[pl.BlockSpec((Bp, TM), lambda k: (0, k)),
                  pl.BlockSpec((TM, hp), lambda k: (k, 0)),
                  pl.BlockSpec((hp, h2p), lambda k: (0, 0)),
                  pl.BlockSpec((1, h2p), lambda k: (0, 0)),
                  pl.BlockSpec((h2p, cp), lambda k: (0, 0)),
                  pl.BlockSpec((1, cp), lambda k: (0, 0))],
        out_specs=pl.BlockSpec((Bp, cp), lambda k: (0, 0)),
        scratch_shapes=[pltpu.VMEM((Bp, hp), jnp.float32)],
        compiler_params=_cparams(("arbitrary",), vmem_limit),
    )(pool, h, params["wf1"], params["bf1"], params["wf2"], params["bf2"])

    return out[:B, :num_class]


# ----------------------------------------------------------------------------
# Pure-JAX reference + parameter init
# ----------------------------------------------------------------------------
def spmotif_reference(x, edge_index, batch, edge_attr, raw, num_graphs,
                      edge_atten=None):
    """Pure-JAX f32 reference mirroring the PyTorch forward semantics."""
    src, dst = edge_index[0], edge_index[1]
    w = edge_attr.reshape(-1).astype(jnp.float32)
    if edge_atten is not None:
        w = w * edge_atten.reshape(-1).astype(jnp.float32)

    h = x.astype(jnp.float32) @ raw["w_emb"] + raw["b_emb"]
    for l in range(len(raw["w1"])):
        a = h @ raw["w1"][l] + raw["b1"][l]
        b = h @ raw["w2"][l]
        c = h @ raw["w3"][l] + raw["b3"][l]
        msg = (a[src] - b[dst]) * w[:, None]
        agg = jnp.zeros_like(h).at[dst].add(msg)
        h = jnp.maximum(agg + c, 0.0)
    onehot = (batch[None, :] == jnp.arange(num_graphs)[:, None]).astype(jnp.float32)
    counts = jnp.clip(jnp.sum(onehot, axis=1, keepdims=True), 1.0, None)
    graph = (onehot / counts) @ h
    t = jnp.maximum(graph @ raw["wf1"] + raw["bf1"], 0.0)
    return t @ raw["wf2"] + raw["bf2"]


def init_params(key, x_dim, hidden, n_layers, num_class):
    """Returns (kernel_params: lane-padded & fused, raw_params: reference)."""
    hp = _round_up(hidden, LANE)
    h2 = 2 * hidden
    h2p = _round_up(h2, LANE)
    cp = _round_up(num_class, LANE)

    def lin(k, fan_in, fan_out):
        bound = 1.0 / jnp.sqrt(float(fan_in))
        kw, kb = jax.random.split(k)
        wgt = jax.random.uniform(kw, (fan_in, fan_out), jnp.float32, -bound, bound)
        bias = jax.random.uniform(kb, (fan_out,), jnp.float32, -bound, bound)
        return wgt, bias

    keys = jax.random.split(key, 4 + 3 * n_layers)
    w_emb, b_emb = lin(keys[0], x_dim, hidden)

    raw = dict(w_emb=w_emb, b_emb=b_emb, w1=[], b1=[], w2=[], w3=[], b3=[])
    w123_layers, b123_layers = [], []
    for l in range(n_layers):
        w1, b1 = lin(keys[1 + 3 * l], hidden, hidden)
        w2, _ = lin(keys[2 + 3 * l], hidden, hidden)     # lin2: bias=False
        w3, b3 = lin(keys[3 + 3 * l], hidden, hidden)
        raw["w1"].append(w1); raw["b1"].append(b1)
        raw["w2"].append(w2)
        raw["w3"].append(w3); raw["b3"].append(b3)
        # fused, lane-padded [Hp, 3*Hp] weight: blocks at 0, Hp, 2*Hp lanes
        w123 = jnp.zeros((hp, 3 * hp), jnp.float32)
        w123 = w123.at[:hidden, 0 * hp:0 * hp + hidden].set(w1)
        w123 = w123.at[:hidden, 1 * hp:1 * hp + hidden].set(w2)
        w123 = w123.at[:hidden, 2 * hp:2 * hp + hidden].set(w3)
        b123 = jnp.zeros((1, 3 * hp), jnp.float32)
        b123 = b123.at[0, 0 * hp:0 * hp + hidden].set(b1)
        b123 = b123.at[0, 2 * hp:2 * hp + hidden].set(b3)
        w123_layers.append(w123)
        b123_layers.append(b123)

    wf1, bf1 = lin(keys[1 + 3 * n_layers], hidden, h2)
    wf2, bf2 = lin(keys[2 + 3 * n_layers], h2, num_class)
    raw.update(wf1=wf1, bf1=bf1, wf2=wf2, bf2=bf2)

    # TODO(synk): conf_mlp / cq heads are not on the forward() path, so they are
    # not lowered to the kernels.
    kernel_params = dict(
        w_emb=jnp.pad(w_emb, ((0, 0), (0, hp - hidden))),
        b_emb=jnp.pad(b_emb, (0, hp - hidden)).reshape(1, hp),
        w123=jnp.stack(w123_layers),                      # [L, Hp, 3*Hp]
        b123=jnp.stack(b123_layers),                      # [L, 1, 3*Hp]
        wf1=jnp.pad(wf1, ((0, hp - hidden), (0, h2p - h2))),
        bf1=jnp.pad(bf1, (0, h2p - h2)).reshape(1, h2p),
        wf2=jnp.pad(wf2, ((0, h2p - h2), (0, cp - num_class))),
        bf2=jnp.pad(bf2, (0, cp - num_class)).reshape(1, cp),
    )
    return kernel_params, raw


if __name__ == "__main__":
    # Small, SPMotif-like shapes.
    x_dim, edge_attr_dim, num_class = 4, 1, 3
    hidden, n_layers = 64, 2
    N, E, B = 32, 64, 2  # nodes, edges, graphs

    key = jax.random.PRNGKey(0)
    k_x, k_e, k_w, k_p = jax.random.split(key, 4)

    x = jax.random.normal(k_x, (N, x_dim), jnp.float32)
    # Random directed edges kept within each graph (nodes 0..15 -> graph 0,
    # 16..31 -> graph 1), PyG convention edge_index = [src; dst].
    half = N // 2
    ks, kd = jax.random.split(k_e)
    src0 = jax.random.randint(ks, (E // 2,), 0, half)
    dst0 = jax.random.randint(kd, (E // 2,), 0, half)
    edge_index = jnp.stack([
        jnp.concatenate([src0, src0 + half]),
        jnp.concatenate([dst0, dst0 + half]),
    ]).astype(jnp.int32)
    edge_attr = jax.random.uniform(k_w, (E, edge_attr_dim), jnp.float32, 0.5, 1.5)
    batch = jnp.concatenate([jnp.zeros((half,), jnp.int32),
                             jnp.ones((half,), jnp.int32)])

    kernel_params, raw_params = init_params(k_p, x_dim, hidden, n_layers, num_class)

    out = spmotif_forward(x, edge_index, batch, edge_attr, kernel_params,
                          B, num_class)
    out = jax.block_until_ready(out)

    ref = spmotif_reference(x, edge_index, batch, edge_attr, raw_params, B)
    assert out.shape == (B, num_class)
    # Tolerance covers the bf16 adjacency / lin1 projection MXU inputs, and on
    # v6e/v7x also the bf16 storage of activations; accumulation stays f32.
    _, _act = _chip_prefs()
    tol = 2e-2 if _act == jnp.float32 else 4e-2
    assert jnp.allclose(out, ref, rtol=tol, atol=tol), (out, ref)

    print("KERNEL_OK")
</pallas_src>

<mosaic_0001>
module attributes {stable_mosaic.version = 11 : i64} {
  func.func @embed_kernel(%arg0: i32, %arg1: memref<128x4xf32, #tpu.memory_space<vmem>>, %arg2: memref<4x128xf32, #tpu.memory_space<vmem>>, %arg3: memref<1x128xf32, #tpu.memory_space<vmem>>, %arg4: memref<128x128xf32, #tpu.memory_space<vmem>>) attributes {dimension_semantics = [#tpu.dimension_semantics<parallel>], iteration_bounds = array<i64: 1>, scalar_prefetch = 0 : i64, scratch_operands = 0 : i64, tpu.core_type = #tpu.core_type<tc>, window_params = [{transform_indices = @transform_0, window_bounds = array<i64: 128, 4>}, {pipeline_mode = #tpu.pipeline_mode<synchronous>, transform_indices = @transform_1, window_bounds = array<i64: 4, 128>}, {pipeline_mode = #tpu.pipeline_mode<synchronous>, transform_indices = @transform_2, window_bounds = array<i64: 1, 128>}, {transform_indices = @transform_3, window_bounds = array<i64: 128, 128>}]} {
    %c0 = arith.constant 0 : index
    %c0_0 = arith.constant 0 : index
    %0 = vector.load %arg1[%c0, %c0_0] : memref<128x4xf32, #tpu.memory_space<vmem>>, vector<128x4xf32>
    %c0_1 = arith.constant 0 : index
    %c0_2 = arith.constant 0 : index
    %1 = vector.load %arg2[%c0_1, %c0_2] : memref<4x128xf32, #tpu.memory_space<vmem>>, vector<4x128xf32>
    %cst = arith.constant dense<0.000000e+00> : vector<128x128xf32>
    %2 = tpu.matmul %0, %1, %cst {dimension_numbers = #tpu.dot_dimension_numbers<[1], [0], [0], [1], [0, 0, 1, 1], [], []>} : vector<128x4xf32>, vector<4x128xf32>, vector<128x128xf32> -> vector<128x128xf32>
    %c0_3 = arith.constant 0 : index
    %c0_4 = arith.constant 0 : index
    %3 = vector.load %arg3[%c0_3, %c0_4] : memref<1x128xf32, #tpu.memory_space<vmem>>, vector<1x128xf32>
    %4 = vector.broadcast %3 : vector<1x128xf32> to vector<128x128xf32>
    %5 = arith.addf %2, %4 : vector<128x128xf32>
    %c0_5 = arith.constant 0 : index
    %c0_6 = arith.constant 0 : index
    %6 = vector.load %arg4[%c0_5, %c0_6] : memref<128x128xf32, #tpu.memory_space<vmem>>, vector<128x128xf32>
    tpu.vector_store %arg4[%c0_5, %c0_6], %5 {strides = array<i32>} : memref<128x128xf32, #tpu.memory_space<vmem>>, vector<128x128xf32>,
    return
  }
  func.func @transform_0(%arg0: i32) -> (i32, i32) {
    %c0_i32 = arith.constant 0 : i32
    %c0_i32_0 = arith.constant 0 : i32
    return %arg0, %c0_i32 : i32, i32
  }
  func.func @transform_1(%arg0: i32) -> (i32, i32) {
    %c0_i32 = arith.constant 0 : i32
    %c0_i32_0 = arith.constant 0 : i32
    %c0_i32_1 = arith.constant 0 : i32
    return %c0_i32, %c0_i32_0 : i32, i32
  }
  func.func @transform_2(%arg0: i32) -> (i32, i32) {
    %c0_i32 = arith.constant 0 : i32
    %c0_i32_0 = arith.constant 0 : i32
    %c0_i32_1 = arith.constant 0 : i32
    return %c0_i32, %c0_i32_0 : i32, i32
  }
  func.func @transform_3(%arg0: i32) -> (i32, i32) {
    %c0_i32 = arith.constant 0 : i32
    %c0_i32_0 = arith.constant 0 : i32
    return %arg0, %c0_i32 : i32, i32
  }
}

</mosaic_0001>

<bundles_post_ra>
// kernel: tpu_custom_call.1
= control target key start
LH: loop header
LB: loop body
LE: loop exit
PB: predicated region body
PF: predicated region fallthrough
CT: control target
= control target key end

     0   :  { %vm88_vm0 = vcmask 1043456   ;;  %vm39_vm1 = vcmask 31744   ;;  %s464_s0 = inlined_call_operand.vmem [shape: f32[128,4], index: 0, kind: input, shape index: {}]   ;;  %s465_s1 = inlined_call_operand.vmem [shape: f32[4,128], index: 1, kind: input, shape index: {}]   ;;  %s466_s2 = inlined_call_operand.vmem [shape: f32[1,128], index: 2, kind: input, shape index: {}]   ;;  %s467_s3 = inlined_call_operand.hbm [shape: f32[128,128], index: 3, kind: output, shape index: {}]  }
   0x1   :  { %v31_v0 = vld [vmem:[%s465_s1] sm:$0xf]  ;;  %v16_v3 = vld [vmem:[%s464_s0 + $0x8] sm:$0xff]  ;;  %v17_v5 = vld [vmem:[%s464_s0 + $0x10] sm:$0xff] }
   0x2   :  { %v15_v1 = vld [vmem:[%s464_s0] sm:$0xff]  ;;  %304 = vmatprep.subr.msk.mxu0 %vm88_vm0, %v31_v0  ;;  %330 = vmatprep.subr.msk.mxu1 %vm88_vm0, %v31_v0  ;;  %v24_v4 = vld [vmem:[%s464_s0 + $0x48] sm:$0xff]  ;;  %v25_v6 = vld [vmem:[%s464_s0 + $0x50] sm:$0xff] }
   0x3   :  { %v23_v2 = vld [vmem:[%s464_s0 + $0x40] sm:$0xff]  ;;  %305 = vmatpush3.msk.msra.mxu0 %vm88_vm0, %v31_v0  ;;  %331 = vmatpush3.msk.msra.mxu1 %vm88_vm0, %v31_v0  ;;  %v18_v7 = vld [vmem:[%s464_s0 + $0x18] sm:$0xff] }
   0x4   :  { %306 = vmatprep.mubr.msk.f32.mxu0 %vm39_vm1, %v15_v1  ;;  %318 = vmatprep.mubr.msk.f32.mxu1 %vm39_vm1, %v23_v2  ;;  %v26_v8 = vld [vmem:[%s464_s0 + $0x58] sm:$0xff] }
   0x5   :  { %307 = vmatmul.mubr.msk.f32.vlgmr.msra.gmra.mrb[0].mxu0 %vm39_vm1, %v16_v3  ;;  %319 = vmatmul.mubr.msk.f32.vlgmr.msra.gmra.mrb[0].mxu1 %vm39_vm1, %v24_v4 }
   0x6   :  { %309 = vmatprep.mubr.msk.f32.mxu0 %vm39_vm1, %v17_v5  ;;  %321 = vmatprep.mubr.msk.f32.mxu1 %vm39_vm1, %v25_v6 }
   0x7   :  { %8 = vsyncpa [#allocation3], 0  ;;  %v19_v9 = vld [vmem:[%s464_s0 + $0x20] sm:$0xff]  ;;  %v20_v11 = vld [vmem:[%s464_s0 + $0x28] sm:$0xff] }
   0x8   :  { %v27_v10 = vld [vmem:[%s464_s0 + $0x60] sm:$0xff]  ;;  %v28_v12 = vld [vmem:[%s464_s0 + $0x68] sm:$0xff]  ;;  %v21_v13 = vld [vmem:[%s464_s0 + $0x30] sm:$0xff] }
   0x9   :  { %310 = vmatmul.mubr.msk.f32.gmra.mrb[2].mxu0 %vm39_vm1, %v18_v7  ;;  %322 = vmatmul.mubr.msk.f32.gmra.mrb[2].mxu1 %vm39_vm1, %v26_v8  ;;  %v29_v14 = vld [vmem:[%s464_s0 + $0x70] sm:$0xff]  ;;  %v22_v15 = vld [vmem:[%s464_s0 + $0x38] sm:$0xff]  ;;  %v269_v17 = vld [vmem:[%s466_s2] ss:$0 sm:$0xff] }
   0xa   :  { %312 = vmatprep.mubr.msk.f32.mxu0 %vm39_vm1, %v19_v9  ;;  %324 = vmatprep.mubr.msk.f32.mxu1 %vm39_vm1, %v27_v10  ;;  %v30_v16 = vld [vmem:[%s464_s0 + $0x78] sm:$0xff]  ;;  %s359_s0 = smov [#allocation2]  }
   0xb   :  { %s258_s2 = sshll.u32 %s359_s0, 4  ;;  %s259_s2 = int_to_ptr.vmem [resolvable:$true] %s258_s2 }
   0xc   :  { %s335_s20 = scalar_lea.vmem %s259_s2, 2048  ;;  %p340_p1 = scmp.lt.s32.totalorder %s259_s2, %s259_s2 }
   0xd   :  { %313 = vmatmul.mubr.msk.f32.gmra.mrb[4].mxu0 %vm39_vm1, %v20_v11  ;;  %325 = vmatmul.mubr.msk.f32.gmra.mrb[4].mxu1 %vm39_vm1, %v28_v12  ;;  %p336_p0 = scmp.ne.s32.totalorder %s259_s2, %s335_s20  ;;  %p341_p2 = scmp.lt.s32.totalorder %s335_s20, %s335_s20 }
   0xe   :  { %315 = vmatprep.mubr.msk.f32.mxu0 %vm39_vm1, %v21_v13  ;;  %327 = vmatprep.mubr.msk.f32.mxu1 %vm39_vm1, %v29_v14 }
   0xf   :  { %p342_p3 = por %p341_p2, %p340_p1 }
  0x11   :  { %316 = vmatmul.mubr.msk.f32.gmra.mrb[6].mxu0 %vm39_vm1, %v22_v15  ;;  %328 = vmatmul.mubr.msk.f32.gmra.mrb[6].mxu1 %vm39_vm1, %v30_v16  ;;  %p343_p4 = pnand %p342_p3, %p336_p0 }
  0xd8   :  { %v308_v18 = vpop.f32.mrb[0].mxu0  ;;  %v320_v19 = vpop.f32.mrb[0].mxu1 }
  0xd9   :  { %v164_v20 = vadd.f32 %v308_v18, %v269_v17  ;;  %v204_v21 = vadd.f32 %v320_v19, %v269_v17  ;;  %v158_v22 = vpop.f32.mrb[1].mxu0  ;;  %v198_v23 = vpop.f32.mrb[1].mxu1 }
  0xda   :  { %v159_v24 = vadd.f32 %v269_v17, %v158_v22  ;;  %v199_v25 = vadd.f32 %v269_v17, %v198_v23 }
  0xdb   :  { %238 = vst [vmem:[#allocation2 + $0x8] sm:$0xff] %v164_v20  ;;  %246 = vst [vmem:[#allocation2 + $0x48] sm:$0xff] %v204_v21 }
  0xdc   :  { %237 = vst [vmem:[#allocation2] sm:$0xff] %v159_v24  ;;  %245 = vst [vmem:[#allocation2 + $0x40] sm:$0xff] %v199_v25  ;;  %v311_v26 = vpop.f32.mrb[2].mxu0  ;;  %v323_v27 = vpop.f32.mrb[2].mxu1 }
  0xdd   :  { %v174_v28 = vadd.f32 %v311_v26, %v269_v17  ;;  %v214_v29 = vadd.f32 %v323_v27, %v269_v17  ;;  %v168_v30 = vpop.f32.mrb[3].mxu0  ;;  %v208_v31 = vpop.f32.mrb[3].mxu1 }
  0xde   :  { %v169_v32 = vadd.f32 %v269_v17, %v168_v30  ;;  %v209_v33 = vadd.f32 %v269_v17, %v208_v31 }
  0xdf   :  { %240 = vst [vmem:[#allocation2 + $0x18] sm:$0xff] %v174_v28  ;;  %248 = vst [vmem:[#allocation2 + $0x58] sm:$0xff] %v214_v29 }
  0xe0   :  { %239 = vst [vmem:[#allocation2 + $0x10] sm:$0xff] %v169_v32  ;;  %247 = vst [vmem:[#allocation2 + $0x50] sm:$0xff] %v209_v33  ;;  %v314_v34 = vpop.f32.mrb[4].mxu0  ;;  %v326_v35 = vpop.f32.mrb[4].mxu1 }
  0xe1   :  { %v184_v36 = vadd.f32 %v314_v34, %v269_v17  ;;  %v224_v37 = vadd.f32 %v326_v35, %v269_v17  ;;  %v178_v38 = vpop.f32.mrb[5].mxu0  ;;  %v218_v39 = vpop.f32.mrb[5].mxu1 }
  0xe2   :  { %v179_v40 = vadd.f32 %v269_v17, %v178_v38  ;;  %v219_v41 = vadd.f32 %v269_v17, %v218_v39 }
  0xe3   :  { %242 = vst [vmem:[#allocation2 + $0x28] sm:$0xff] %v184_v36  ;;  %250 = vst [vmem:[#allocation2 + $0x68] sm:$0xff] %v224_v37 }
  0xe4   :  { %241 = vst [vmem:[#allocation2 + $0x20] sm:$0xff] %v179_v40  ;;  %249 = vst [vmem:[#allocation2 + $0x60] sm:$0xff] %v219_v41  ;;  %v317_v42 = vpop.f32.mrb[6].mxu0  ;;  %v329_v43 = vpop.f32.mrb[6].mxu1 }
  0xe5   :  { %v194_v44 = vadd.f32 %v317_v42, %v269_v17  ;;  %v234_v45 = vadd.f32 %v329_v43, %v269_v17  ;;  %v188_v46 = vpop.f32.mrb[7].mxu0  ;;  %v228_v47 = vpop.f32.mrb[7].mxu1 }
  0xe6   :  { %v189_v48 = vadd.f32 %v269_v17, %v188_v46  ;;  %v229_v49 = vadd.f32 %v269_v17, %v228_v47 }
  0xe7   :  { %244 = vst [vmem:[#allocation2 + $0x38] sm:$0xff] %v194_v44  ;;  %252 = vst [vmem:[#allocation2 + $0x78] sm:$0xff] %v234_v45 }
  0xe8   :  { %243 = vst [vmem:[#allocation2 + $0x30] sm:$0xff] %v189_v48  ;;  %251 = vst [vmem:[#allocation2 + $0x70] sm:$0xff] %v229_v49 }
  0xe9   :  { %346 = shalt.err (!%p343_p4)
}
  0xea   :  { %s347_s22 = scalar_lea.hbm %s467_s3, 2048 }
  0xeb   :  { %p348_p5 = scmp.ne.s32.totalorder %s467_s3, %s347_s22  ;;  %p351_p6 = scmp.lt.u32.totalorder %s347_s22, %s467_s3 }
  0xed   :  { %p353_p7 = pnand %p351_p6, %p348_p5 }
  0xef   :  { %356 = shalt.err (!%p353_p7)
}
  0xf0   :  { %s360_s27 = smov 128   ;;  %s361_s28 = smov 8  }
  0xf1   :  { %264 = dma.vmem_to_hbm [thread:$0]  %s259_s2, 2048, %s467_s3, [#allocation3], %s360_s27, %s360_s27, %s361_s28  }
  0xf2   :  { %357 = dma.done.wait [#allocation3], 2048  }
  0xf3   :  { %358 = vsyncadd [#allocation3], 4294965248 }
  0xf4   :  { %268 = vsyncpa [#allocation3], 1 }

</bundles_post_ra>
